<compile_context>
chip_gen: v5e
topology: v5e:2x2
jax: 0.10.0
libtpu: 0.0.40
codegen_flags: <defaults>
</compile_context>

<pallas_src>
import functools

import jax
import jax.numpy as jnp
import numpy as np
from jax.experimental import pallas as pl
from jax.experimental.pallas import tpu as pltpu


def _round_up(x, m):
    return (x + m - 1) // m * m


def _largest_divisor_leq(n, cap):
    cap = int(max(1, min(cap, n)))
    for d in range(cap, 0, -1):
        if n % d == 0:
            return d
    return 1


def memn2n_kernel(x_ref, w_ref, u0_ref, out_ref, mc_ref, *, hops):
    """Grid = (batch_tiles, mem_tiles); mem (axis 1) is innermost / 'arbitrary'."""
    mi = pl.program_id(1)
    mt, bt, _, _ = x_ref.shape                     # (mem_tile, batch_tile, L, E)
    hp = out_ref.shape[-1]                         # padded hidden, multiple of 128

    # ---- streaming phase: f32 L-sum, then one (rows, E) x (E, 2Hp) MXU pass ----------
    blk = x_ref[...].astype(jnp.float32)                                   # bf16 -> f32
    xs = jnp.sum(blk.reshape(mt * bt, blk.shape[2], blk.shape[3]), axis=1)  # (mt*bt, E)
    mc = jnp.dot(xs, w_ref[...], preferred_element_type=jnp.float32)        # (mt*bt, 2Hp)
    start = pl.multiple_of(mi * mt, mt)
    mc_ref[pl.ds(start, mt), :, :] = mc.reshape(mt, bt, 2 * hp)

    # ---- finalize once per batch tile (last mem step): hops over the VMEM scratch ----
    @pl.when(mi == pl.num_programs(1) - 1)
    def _finalize():
        u = u0_ref[...]                             # (Bt, Hp) f32, precomputed in wrapper
        mc_all = mc_ref[...]                        # (mem_size, Bt, 2Hp) f32
        m = mc_all[:, :, :hp]                       # tile-aligned lane slices (free views)
        c = mc_all[:, :, hp:]
        # hops is small & static -> unrolled.  Working set bounded by batch_tile.
        # TODO(synk): for very large mem_size*batch_tile, switch to a per-batch-row
        #             fori_loop of MXU dot_generals instead of the VPU multiply/reduce.
        for _ in range(hops):
            # scores[j, b] = m[j, b, :] . u[b, :]  (lane reduce; batch stays on sublanes)
            scores = jnp.sum(m * u[None, :, :], axis=-1, keepdims=True)     # (M, Bt, 1)
            scores = scores - jnp.max(scores, axis=0, keepdims=True)
            ex = jnp.exp(scores)
            denom = jnp.sum(ex, axis=0, keepdims=True)                      # (1, Bt, 1)
            r = pl.reciprocal(denom, approx=True)                           # EUP slot
            r = r * (2.0 - denom * r)                                       # Newton x2 ->
            r = r * (2.0 - denom * r)                                       #  f32-exact
            p = ex * r                                                      # (M, Bt, 1)
            o = jnp.sum(p * c, axis=0)                                      # (Bt, Hp)
            u = u + o
        out_ref[...] = u.astype(out_ref.dtype)      # lane-dense (Bt, Hp) store


def layer_memn2n_forward(inputs, questions, A, C, Bw, *, hops,
                         compute_dtype=jnp.bfloat16,
                         batch_tile=None, mem_tile=None):
    """inputs: (mem, batch, L, emb); questions: (batch, L, emb) -> (batch, 1, hidden) f32."""
    mem_size, batch, max_length, emb = inputs.shape
    hidden = A.shape[1]

    # -- lane-dense hidden padding: Hp multiple of 128; zero weight columns stay inert. --
    hp = _round_up(hidden, 128)
    w_ac = jnp.concatenate(
        [jnp.pad(A.astype(jnp.float32), ((0, 0), (0, hp - hidden))),
         jnp.pad(C.astype(jnp.float32), ((0, 0), (0, hp - hidden)))], axis=1)   # (E, 2Hp)

    # -- u0 = sum_l(q_l @ B): tiny matmul done once here in f32, not in the kernel. -----
    u0 = jnp.sum(questions.astype(jnp.float32) @ Bw.astype(jnp.float32), axis=1)
    u0 = jnp.pad(u0, ((0, 0), (0, hp - hidden)))                                # (batch, Hp)

    # -- batch padding only if batch is not a multiple of 8 (zero rows are inert). ------
    batch_pad = _round_up(batch, 8)
    x = inputs
    if batch_pad != batch:
        x = jnp.pad(x, ((0, 0), (0, batch_pad - batch), (0, 0), (0, 0)))
        u0 = jnp.pad(u0, ((0, batch_pad - batch), (0, 0)))
    # Streamed operand stays in native (mem, batch, L, emb) order: no transpose pass.
    x = x.astype(compute_dtype)
    itemsize = jnp.dtype(compute_dtype).itemsize
    # TODO(synk): optional fp8-e4m3 x-streaming on v7x (full-rate fp8 MXU), gated per chip.

    # -- generation-aware VMEM budget (~85% of physical: ~108 MiB v5e/v6e, ~54 MiB v7x) --
    try:
        vmem_cap = int(getattr(pltpu.get_tpu_info(), "vmem_capacity_bytes", 0)) or (64 << 20)
    except Exception:
        vmem_cap = 64 << 20
    vmem_limit = max(int(0.85 * vmem_cap), 32 << 20)

    # -- tile selection: scratch scales with batch_tile; x block targets ~2 MiB padded. --
    if batch_tile is None:
        batch_tile = 8
        for bt in range(min(batch_pad, 64), 7, -8):
            if batch_pad % bt == 0 and mem_size * bt * 2 * hp * 4 <= vmem_limit // 3:
                batch_tile = bt
                break
    assert batch_tile % 8 == 0 and batch_pad % batch_tile == 0
    sub = max(8, 8 * (4 // itemsize))               # sublane packing: f32 -> 8, bf16 -> 16
    per_mem = batch_tile * _round_up(max_length, sub) * _round_up(emb, 128) * itemsize
    if mem_tile is None:
        target = max(per_mem, min(2 << 20, vmem_limit // 8))
        mem_tile = _largest_divisor_leq(mem_size, target // per_mem)
    assert mem_size % mem_tile == 0
    num_bt = batch_pad // batch_tile
    num_mt = mem_size // mem_tile

    cost = pl.CostEstimate(
        flops=int(mem_size * batch_pad * max_length * emb              # in-kernel L-sum
                  + 2 * mem_size * batch_pad * emb * 2 * hp            # fused [A|C] matmul
                  + hops * 4 * batch_pad * mem_size * hp),             # hop math
        transcendentals=int(hops * batch_pad * mem_size),
        bytes_accessed=int(mem_size * batch_pad * max_length * emb * itemsize
                           + emb * 2 * hp * 4 + 2 * batch_pad * hp * 4))

    u_pad = pl.pallas_call(
        functools.partial(memn2n_kernel, hops=hops),
        out_shape=jax.ShapeDtypeStruct((batch_pad, hp), jnp.float32),
        grid_spec=pltpu.PrefetchScalarGridSpec(
            num_scalar_prefetch=0,
            grid=(num_bt, num_mt),
            in_specs=[
                # streamed in native (mem, batch, L, E) order
                pl.BlockSpec((mem_tile, batch_tile, max_length, emb),
                             lambda bi, mi: (mi, bi, 0, 0)),
                pl.BlockSpec((emb, 2 * hp), lambda bi, mi: (0, 0)),       # fused [A|C]
                pl.BlockSpec((batch_tile, hp), lambda bi, mi: (bi, 0)),   # u0 (precomputed)
            ],
            out_specs=pl.BlockSpec((batch_tile, hp), lambda bi, mi: (bi, 0)),
            scratch_shapes=[pltpu.VMEM((mem_size, batch_tile, 2 * hp), jnp.float32)],
        ),
        compiler_params=pltpu.CompilerParams(
            dimension_semantics=("parallel", "arbitrary"),   # batch across cores on v7x
            vmem_limit_bytes=vmem_limit),
        cost_estimate=cost,
    )(x, w_ac, u0)

    return u_pad[:batch, :hidden][:, None, :]       # (B, 1, H) to match the module


def layer_memn2n_reference(inputs, questions, A, C, Bw, *, hops):
    """Pure-JAX mirror of the PyTorch forward (keepdim reduction semantics)."""
    u = jnp.sum(questions @ Bw, axis=1, keepdims=True)            # (B, 1, H)
    m = jnp.transpose(jnp.sum(inputs @ A, axis=2), (1, 0, 2))     # (B, M, H)
    c = jnp.transpose(jnp.sum(inputs @ C, axis=2), (1, 0, 2))     # (B, M, H)
    for _ in range(hops):
        scores = jnp.einsum('bih,bmh->bim', u, m)                 # (B, 1, M)
        p = jax.nn.softmax(scores, axis=-1)
        o = jnp.einsum('bim,bmh->bih', p, c)                      # (B, 1, H)
        u = u + o
    return u


def _run_case(name, *, mem_size, batch, max_length, emb, hidden, hops,
              compute_dtype, rtol, atol, **kw):
    key = jax.random.PRNGKey(0)
    k_in, k_q, k_a, k_c, k_b = jax.random.split(key, 5)
    inputs = jax.random.normal(k_in, (mem_size, batch, max_length, emb), jnp.float32)
    questions = jax.random.normal(k_q, (batch, max_length, emb), jnp.float32)
    # Deterministic parameter init (the module's __init__ leaves A/B/C uninitialized).
    A = 0.1 * jax.random.normal(k_a, (emb, hidden), jnp.float32)
    C = 0.1 * jax.random.normal(k_c, (emb, hidden), jnp.float32)
    Bw = 0.1 * jax.random.normal(k_b, (emb, hidden), jnp.float32)

    u = jax.block_until_ready(
        layer_memn2n_forward(inputs, questions, A, C, Bw, hops=hops,
                             compute_dtype=compute_dtype, **kw))
    assert u.shape == (batch, 1, hidden)

    # The kernel only rounds the streamed `inputs` to compute_dtype; weights/questions
    # stay f32 -> compare against the reference on identically-rounded inputs.
    inputs_ref = inputs.astype(compute_dtype).astype(jnp.float32)
    u_ref = jax.block_until_ready(
        layer_memn2n_reference(inputs_ref, questions, A, C, Bw, hops=hops))
    np.testing.assert_allclose(np.asarray(u), np.asarray(u_ref), rtol=rtol, atol=atol)


if __name__ == "__main__":
    # f32 streaming: multi-step mem grid; exercises batch padding (2->8) and H padding (32->128).
    _run_case("f32", mem_size=8, batch=2, max_length=8, emb=16, hidden=32, hops=3,
              compute_dtype=jnp.float32, rtol=3e-4, atol=3e-4, mem_tile=2)
    # bf16 streaming (halved HBM bytes on the big operand), same config.
    _run_case("bf16", mem_size=8, batch=2, max_length=8, emb=16, hidden=32, hops=3,
              compute_dtype=jnp.bfloat16, rtol=2e-3, atol=2e-3, mem_tile=2)
    # Multiple batch tiles (2 x 8) with a per-memory inner grid; odd emb/hidden sizes.
    _run_case("tiled", mem_size=5, batch=16, max_length=4, emb=24, hidden=40, hops=2,
              compute_dtype=jnp.float32, rtol=3e-4, atol=3e-4,
              batch_tile=8, mem_tile=1)
    print("KERNEL_OK")
</pallas_src>

<mosaic_0001>
module attributes {stable_mosaic.version = 11 : i64} {
  func.func @memn2n_kernel(%arg0: i32, %arg1: i32, %arg2: memref<2x8x8x16xf32, #tpu.memory_space<vmem>>, %arg3: memref<16x256xf32, #tpu.memory_space<vmem>>, %arg4: memref<8x128xf32, #tpu.memory_space<vmem>>, %arg5: memref<8x128xf32, #tpu.memory_space<vmem>>, %arg6: memref<8x8x256xf32, #tpu.memory_space<vmem>>) attributes {dimension_semantics = [#tpu.dimension_semantics<parallel>, #tpu.dimension_semantics<arbitrary>], iteration_bounds = array<i64: 1, 4>, scalar_prefetch = 0 : i64, scratch_operands = 1 : i64, tpu.core_type = #tpu.core_type<tc>, window_params = [{transform_indices = @transform_0, window_bounds = array<i64: 2, 8, 8, 16>}, {pipeline_mode = #tpu.pipeline_mode<synchronous>, transform_indices = @transform_1, window_bounds = array<i64: 16, 256>}, {transform_indices = @transform_2, window_bounds = array<i64: 8, 128>}, {transform_indices = @transform_3, window_bounds = array<i64: 8, 128>}]} {
    %c0 = arith.constant 0 : index
    %c0_0 = arith.constant 0 : index
    %c0_1 = arith.constant 0 : index
    %c0_2 = arith.constant 0 : index
    %0 = vector.load %arg2[%c0, %c0_0, %c0_1, %c0_2] : memref<2x8x8x16xf32, #tpu.memory_space<vmem>>, vector<2x8x8x16xf32>
    %1 = vector.shape_cast %0 : vector<2x8x8x16xf32> to vector<16x8x16xf32>
    %cst = arith.constant dense<0.000000e+00> : vector<16x16xf32>
    %2 = vector.multi_reduction <add>, %1, %cst [1] : vector<16x8x16xf32> to vector<16x16xf32>
    %c0_3 = arith.constant 0 : index
    %c0_4 = arith.constant 0 : index
    %3 = vector.load %arg3[%c0_3, %c0_4] : memref<16x256xf32, #tpu.memory_space<vmem>>, vector<16x256xf32>
    %cst_5 = arith.constant dense<0.000000e+00> : vector<16x256xf32>
    %4 = tpu.matmul %2, %3, %cst_5 {dimension_numbers = #tpu.dot_dimension_numbers<[1], [0], [0], [1], [0, 0, 1, 1], [], []>} : vector<16x16xf32>, vector<16x256xf32>, vector<16x256xf32> -> vector<16x256xf32>
    %c2_i32 = arith.constant 2 : i32
    %5 = arith.muli %arg1, %c2_i32 : i32
    %6 = tpu.assume_multiple %5, 2 : i32
    %7 = vector.shape_cast %4 : vector<16x256xf32> to vector<2x8x256xf32>
    %8 = arith.index_cast %6 : i32 to index
    %c0_6 = arith.constant 0 : index
    %c0_7 = arith.constant 0 : index
    %9 = vector.load %arg6[%8, %c0_6, %c0_7] : memref<8x8x256xf32, #tpu.memory_space<vmem>>, vector<2x8x256xf32>
    tpu.vector_store %arg6[%8, %c0_6, %c0_7], %7 {strides = array<i32>} : memref<8x8x256xf32, #tpu.memory_space<vmem>>, vector<2x8x256xf32>,
    %c3_i32 = arith.constant 3 : i32
    %10 = arith.cmpi eq, %arg1, %c3_i32 : i32
    %11 = arith.extui %10 : i1 to i32
    %c0_i32 = arith.constant 0 : i32
    %12 = arith.cmpi ne, %11, %c0_i32 : i32
    scf.if %12 {
      %c0_8 = arith.constant 0 : index
      %c0_9 = arith.constant 0 : index
      %13 = vector.load %arg4[%c0_8, %c0_9] : memref<8x128xf32, #tpu.memory_space<vmem>>, vector<8x128xf32>
      %c0_10 = arith.constant 0 : index
      %c0_11 = arith.constant 0 : index
      %c0_12 = arith.constant 0 : index
      %14 = vector.load %arg6[%c0_10, %c0_11, %c0_12] : memref<8x8x256xf32, #tpu.memory_space<vmem>>, vector<8x8x256xf32>
      %15 = vector.extract_strided_slice %14 {offsets = [0, 0, 0], sizes = [8, 8, 128], strides = [1, 1, 1]} : vector<8x8x256xf32> to vector<8x8x128xf32>
      %16 = vector.extract_strided_slice %14 {offsets = [0, 0, 128], sizes = [8, 8, 128], strides = [1, 1, 1]} : vector<8x8x256xf32> to vector<8x8x128xf32>
      %17 = vector.shape_cast %13 : vector<8x128xf32> to vector<1x8x128xf32>
      %18 = vector.broadcast %17 : vector<1x8x128xf32> to vector<8x8x128xf32>
      %19 = arith.mulf %15, %18 : vector<8x8x128xf32>
      %cst_13 = arith.constant dense<0.000000e+00> : vector<8x8xf32>
      %20 = vector.multi_reduction <add>, %19, %cst_13 [2] : vector<8x8x128xf32> to vector<8x8xf32>
      %21 = vector.shape_cast %20 : vector<8x8xf32> to vector<8x8x1xf32>
      %cst_14 = arith.constant dense<0xFF800000> : vector<8x1xf32>
      %22 = vector.multi_reduction <maximumf>, %21, %cst_14 [0] : vector<8x8x1xf32> to vector<8x1xf32>
      %23 = vector.shape_cast %22 : vector<8x1xf32> to vector<1x8x1xf32>
      %24 = vector.broadcast %23 : vector<1x8x1xf32> to vector<8x8x1xf32>
      %25 = arith.subf %21, %24 : vector<8x8x1xf32>
      %26 = math.exp %25 : vector<8x8x1xf32>
      %cst_15 = arith.constant dense<0.000000e+00> : vector<8x1xf32>
      %27 = vector.multi_reduction <add>, %26, %cst_15 [0] : vector<8x8x1xf32> to vector<8x1xf32>
      %28 = vector.shape_cast %27 : vector<8x1xf32> to vector<1x8x1xf32>
      %29 = tpu.reciprocal %28 {approx = true} : vector<1x8x1xf32> -> vector<1x8x1xf32>
      %30 = arith.mulf %28, %29 : vector<1x8x1xf32>
      %cst_16 = arith.constant 2.000000e+00 : f32
      %31 = vector.broadcast %cst_16 : f32 to vector<1x8x1xf32>
      %32 = arith.subf %31, %30 : vector<1x8x1xf32>
      %33 = arith.mulf %29, %32 : vector<1x8x1xf32>
      %34 = arith.mulf %28, %33 : vector<1x8x1xf32>
      %cst_17 = arith.constant 2.000000e+00 : f32
      %35 = vector.broadcast %cst_17 : f32 to vector<1x8x1xf32>
      %36 = arith.subf %35, %34 : vector<1x8x1xf32>
      %37 = arith.mulf %33, %36 : vector<1x8x1xf32>
      %38 = vector.broadcast %37 : vector<1x8x1xf32> to vector<8x8x1xf32>
      %39 = arith.mulf %26, %38 : vector<8x8x1xf32>
      %40 = vector.broadcast %39 : vector<8x8x1xf32> to vector<8x8x128xf32>
      %41 = arith.mulf %40, %16 : vector<8x8x128xf32>
      %cst_18 = arith.constant dense<0.000000e+00> : vector<8x128xf32>
      %42 = vector.multi_reduction <add>, %41, %cst_18 [0] : vector<8x8x128xf32> to vector<8x128xf32>
      %43 = arith.addf %13, %42 : vector<8x128xf32>
      %44 = vector.shape_cast %43 : vector<8x128xf32> to vector<1x8x128xf32>
      %45 = vector.broadcast %44 : vector<1x8x128xf32> to vector<8x8x128xf32>
      %46 = arith.mulf %15, %45 : vector<8x8x128xf32>
      %cst_19 = arith.constant dense<0.000000e+00> : vector<8x8xf32>
      %47 = vector.multi_reduction <add>, %46, %cst_19 [2] : vector<8x8x128xf32> to vector<8x8xf32>
      %48 = vector.shape_cast %47 : vector<8x8xf32> to vector<8x8x1xf32>
      %cst_20 = arith.constant dense<0xFF800000> : vector<8x1xf32>
      %49 = vector.multi_reduction <maximumf>, %48, %cst_20 [0] : vector<8x8x1xf32> to vector<8x1xf32>
      %50 = vector.shape_cast %49 : vector<8x1xf32> to vector<1x8x1xf32>
      %51 = vector.broadcast %50 : vector<1x8x1xf32> to vector<8x8x1xf32>
      %52 = arith.subf %48, %51 : vector<8x8x1xf32>
      %53 = math.exp %52 : vector<8x8x1xf32>
      %cst_21 = arith.constant dense<0.000000e+00> : vector<8x1xf32>
      %54 = vector.multi_reduction <add>, %53, %cst_21 [0] : vector<8x8x1xf32> to vector<8x1xf32>
      %55 = vector.shape_cast %54 : vector<8x1xf32> to vector<1x8x1xf32>
      %56 = tpu.reciprocal %55 {approx = true} : vector<1x8x1xf32> -> vector<1x8x1xf32>
      %57 = arith.mulf %55, %56 : vector<1x8x1xf32>
      %cst_22 = arith.constant 2.000000e+00 : f32
      %58 = vector.broadcast %cst_22 : f32 to vector<1x8x1xf32>
      %59 = arith.subf %58, %57 : vector<1x8x1xf32>
      %60 = arith.mulf %56, %59 : vector<1x8x1xf32>
      %61 = arith.mulf %55, %60 : vector<1x8x1xf32>
      %cst_23 = arith.constant 2.000000e+00 : f32
      %62 = vector.broadcast %cst_23 : f32 to vector<1x8x1xf32>
      %63 = arith.subf %62, %61 : vector<1x8x1xf32>
      %64 = arith.mulf %60, %63 : vector<1x8x1xf32>
      %65 = vector.broadcast %64 : vector<1x8x1xf32> to vector<8x8x1xf32>
      %66 = arith.mulf %53, %65 : vector<8x8x1xf32>
      %67 = vector.broadcast %66 : vector<8x8x1xf32> to vector<8x8x128xf32>
      %68 = arith.mulf %67, %16 : vector<8x8x128xf32>
      %cst_24 = arith.constant dense<0.000000e+00> : vector<8x128xf32>
      %69 = vector.multi_reduction <add>, %68, %cst_24 [0] : vector<8x8x128xf32> to vector<8x128xf32>
      %70 = arith.addf %43, %69 : vector<8x128xf32>
      %71 = vector.shape_cast %70 : vector<8x128xf32> to vector<1x8x128xf32>
      %72 = vector.broadcast %71 : vector<1x8x128xf32> to vector<8x8x128xf32>
      %73 = arith.mulf %15, %72 : vector<8x8x128xf32>
      %cst_25 = arith.constant dense<0.000000e+00> : vector<8x8xf32>
      %74 = vector.multi_reduction <add>, %73, %cst_25 [2] : vector<8x8x128xf32> to vector<8x8xf32>
      %75 = vector.shape_cast %74 : vector<8x8xf32> to vector<8x8x1xf32>
      %cst_26 = arith.constant dense<0xFF800000> : vector<8x1xf32>
      %76 = vector.multi_reduction <maximumf>, %75, %cst_26 [0] : vector<8x8x1xf32> to vector<8x1xf32>
      %77 = vector.shape_cast %76 : vector<8x1xf32> to vector<1x8x1xf32>
      %78 = vector.broadcast %77 : vector<1x8x1xf32> to vector<8x8x1xf32>
      %79 = arith.subf %75, %78 : vector<8x8x1xf32>
      %80 = math.exp %79 : vector<8x8x1xf32>
      %cst_27 = arith.constant dense<0.000000e+00> : vector<8x1xf32>
      %81 = vector.multi_reduction <add>, %80, %cst_27 [0] : vector<8x8x1xf32> to vector<8x1xf32>
      %82 = vector.shape_cast %81 : vector<8x1xf32> to vector<1x8x1xf32>
      %83 = tpu.reciprocal %82 {approx = true} : vector<1x8x1xf32> -> vector<1x8x1xf32>
      %84 = arith.mulf %82, %83 : vector<1x8x1xf32>
      %cst_28 = arith.constant 2.000000e+00 : f32
      %85 = vector.broadcast %cst_28 : f32 to vector<1x8x1xf32>
      %86 = arith.subf %85, %84 : vector<1x8x1xf32>
      %87 = arith.mulf %83, %86 : vector<1x8x1xf32>
      %88 = arith.mulf %82, %87 : vector<1x8x1xf32>
      %cst_29 = arith.constant 2.000000e+00 : f32
      %89 = vector.broadcast %cst_29 : f32 to vector<1x8x1xf32>
      %90 = arith.subf %89, %88 : vector<1x8x1xf32>
      %91 = arith.mulf %87, %90 : vector<1x8x1xf32>
      %92 = vector.broadcast %91 : vector<1x8x1xf32> to vector<8x8x1xf32>
      %93 = arith.mulf %80, %92 : vector<8x8x1xf32>
      %94 = vector.broadcast %93 : vector<8x8x1xf32> to vector<8x8x128xf32>
      %95 = arith.mulf %94, %16 : vector<8x8x128xf32>
      %cst_30 = arith.constant dense<0.000000e+00> : vector<8x128xf32>
      %96 = vector.multi_reduction <add>, %95, %cst_30 [0] : vector<8x8x128xf32> to vector<8x128xf32>
      %97 = arith.addf %70, %96 : vector<8x128xf32>
      %c0_31 = arith.constant 0 : index
      %c0_32 = arith.constant 0 : index
      %98 = vector.load %arg5[%c0_31, %c0_32] : memref<8x128xf32, #tpu.memory_space<vmem>>, vector<8x128xf32>
      tpu.vector_store %arg5[%c0_31, %c0_32], %97 {strides = array<i32>} : memref<8x128xf32, #tpu.memory_space<vmem>>, vector<8x128xf32>,
    } else {
    }
    return
  }
  func.func @transform_0(%arg0: i32, %arg1: i32) -> (i32, i32, i32, i32) {
    %c0_i32 = arith.constant 0 : i32
    %c0_i32_0 = arith.constant 0 : i32
    %c0_i32_1 = arith.constant 0 : i32
    return %arg1, %arg0, %c0_i32, %c0_i32_0 : i32, i32, i32, i32
  }
  func.func @transform_1(%arg0: i32, %arg1: i32) -> (i32, i32) {
    %c0_i32 = arith.constant 0 : i32
    %c0_i32_0 = arith.constant 0 : i32
    %c0_i32_1 = arith.constant 0 : i32
    return %c0_i32, %c0_i32_0 : i32, i32
  }
  func.func @transform_2(%arg0: i32, %arg1: i32) -> (i32, i32) {
    %c0_i32 = arith.constant 0 : i32
    %c0_i32_0 = arith.constant 0 : i32
    return %arg0, %c0_i32 : i32, i32
  }
  func.func @transform_3(%arg0: i32, %arg1: i32) -> (i32, i32) {
    %c0_i32 = arith.constant 0 : i32
    %c0_i32_0 = arith.constant 0 : i32
    return %arg0, %c0_i32 : i32, i32
  }
}

</mosaic_0001>

<bundles_post_ra>
// kernel: tpu_custom_call.1
= control target key start
LH: loop header
LB: loop body
LE: loop exit
PB: predicated region body
PF: predicated region fallthrough
CT: control target
= control target key end

     0   :  { %8 = vsyncpa [#allocation4], 0  ;;  %s1532_s0 = inlined_call_operand.hbm [shape: f32[8,8,8,16], index: 0, kind: input, shape index: {}]   ;;  %s1533_s1 = inlined_call_operand.hbm [shape: f32[16,256], index: 1, kind: input, shape index: {}]   ;;  %s1534_s2 = inlined_call_operand.hbm [shape: f32[8,128], index: 2, kind: input, shape index: {}]   ;;  %s1535_s3 = inlined_call_operand.hbm [shape: f32[8,128], index: 3, kind: output, shape index: {}]  }
   0x1   :  { %10 = vsyncpa [#allocation4 + $0x1], 0 }
   0x2   :  { %11 = vsyncpa [#allocation7], 0 }
   0x3   :  { %12 = vsyncpa [#allocation5], 0  ;;  %s1247_s12 = smov 0   ;;  %s1249_s13 = smov 0  }
   0x4   :  { %s1251_s14 = smov 0   ;;  %s1253_s15 = smov 0  }
   0x5   :  { %s1255_s16 = smov 0   ;;  %s1257_s17 = smov 0  }
   0x6 LB: > { %s868_s18 = sadd.s32 4294967295, %s1218_s17   ;;  %p52_p0 = scmp.ne.s32.totalorder %s1202_s13, %s1198_s12  ;;  %s1218_s17 = sphi %s1257_s17, %s18_s17   ;;  %s1214_s16 = sphi %s1255_s16, %s1544_s16   ;;  %s1210_s15 = sphi %s1253_s15, %s1543_s15   ;;  %s1206_s14 = sphi %s1251_s14, %s1542_s14   ;;  %s1202_s13 = sphi %s1249_s13, %s1541_s13   ;;  %s1198_s12 = sphi %s1247_s12, %s1540_s12  }
   0x7   : > { %p1279_p1 = scmp.eq.s32.totalorder %s868_s18, 0  ;;  %p869_p2 = scmp.ge.s32.totalorder %s1218_s17, 1 }
   0x8   : > { %p136_p3 = scmp.lt.s32.totalorder %s1218_s17, 5  ;;  %s147_s23 = sshll.u32 %s1533_s1, 4  ;;  %s148_s23 = int_to_ptr.hbm [resolvable:$true] %s147_s23 }
   0x9   : > { %p1287_p4 = por %p1279_p1, %p52_p0  ;;  %s1220_s25 = smov [#allocation6]  }
   0xa   : > { %p1294_p5 = pnand %p869_p2, %p136_p3  ;;  %s149_s26 = sshll.u32 %s1220_s25, 4  ;;  %s150_s26 = int_to_ptr.vmem [resolvable:$true] %s149_s26 }
   0xb   : > { %s164_s29 = sshll.u32 %s1534_s2, 4  ;;  %s1221_s30 = smov 256   ;;  %s165_s29 = int_to_ptr.hbm [resolvable:$true] %s164_s29 }
   0xc   : > { %p915_p6 = pneg %p1294_p5  ;;  %s1222_s4 = smov 16  }
   0xd   : > { %s1223_s5 = smov [#allocation8]   ;;  %s27_s7 = sadd.s32 1, %s1214_s16 }
   0xe   : > { %p916_p7 = pnand %p915_p6, %p1279_p1  ;;  %s166_s6 = sshll.u32 %s1223_s5, 4  ;;  %s167_s6 = int_to_ptr.vmem [resolvable:$true] %s166_s6 }
   0xf   : > { %s39_s8 = sadd.s32 1, %s1206_s14  ;;  %p28_p8 = scmp.ge.s32.totalorder %s27_s7, 4 }
  0x10   : > { %918 = dma.hbm_to_vmem [thread:$0]  (!%p916_p7), %s148_s23, 512, %s150_s26, [#allocation7], %s1221_s30, %s1221_s30, %s1222_s4  }
  0x11   : > { %921 = dma.hbm_to_vmem [thread:$0]  (!%p916_p7), %s165_s29, 128, %s167_s6, [#allocation7]  }
  0x12   : > { %p46_p9 = scmp.ne.s32.totalorder %s1206_s14, %s1202_s13  ;;  %p47_p10 = scmp.eq.s32.totalorder %s1218_s17, 0 }
  0x13   : > { %p928_p11 = scmp.lt.s32.totalorder %s1218_s17, 4  ;;  %s1546_s7 = smov (%p28_p8, %s27_s7), 0 }
  0x14   : > { %p1313_p12 = por %p47_p10, %p46_p9  ;;  %s177_s10 = sand.u32 1, %s1206_s14  }
  0x15   : > { %s34_s11 = ssub.s32 %s1214_s16, %s1546_s7  ;;  %s873_s12 = sshll.u32 %s177_s10, 7 }
  0x16   : > { %p37_p13 = scmp.eq.s32.totalorder %s34_s11, 0  ;;  %s894_s21 = sshll.u32 %s1214_s16, 7 }
  0x17   : > { %s189_s26 = scalar_lea.hbm %s1532_s0, %s894_s21  ;;  %s181_s27 = scalar_lea.vmem [#allocation3], %s873_s12 }
  0x18   : > { %s1322_s22 = scalar_select %p37_p13, %s1206_s14, %s39_s8  }
  0x19   : > { %s192_s28 = sshll.u32 %s181_s27, 4  ;;  %s190_s29 = sshll.u32 %s189_s26, 4  ;;  %s193_s28 = int_to_ptr.vmem [resolvable:$true] %s192_s28  ;;  %s191_s29 = int_to_ptr.hbm [resolvable:$true] %s190_s29 }
  0x1a   : > { %p923_p0 = pnand %p928_p11, %p1313_p12  ;;  %s178_s30 = scalar_lea.sflag [#allocation4], %s177_s10 }
  0x1b   : > { %s1224_s4 = smov 128   ;;  %s1225_s5 = smov 8  }
  0x1c   : > { %925 = dma.hbm_to_vmem [thread:$0]  (!%p923_p0), %s191_s29, 2048, %s193_s28, %s178_s30, %s1224_s4, %s1224_s4, %s1225_s5  }
  0x1d   : > { %204 = sbr.rel (%p1294_p5) target bundleno = 838 (0x346), region = 32  ;;  %s206_s6 = sand.u32 (!%p1294_p5), 1, %s1202_s13  }
  0x1e   : > { %s878_s8 = sshll.u32 (!%p1294_p5), %s206_s6, 7  ;;  %s207_s11 = scalar_lea.sflag (!%p1294_p5), [#allocation4], %s206_s6 }
  0x1f   : > { %s1334_s12 = scalar_lea.vmem (!%p1294_p5), [#allocation3], %s878_s8 }
  0x22   : > { %1185 = dma.done.wait (%p1287_p4), %s207_s11, 2048  }
  0x23   : > { %1187 = vsyncadd (%p1287_p4), %s207_s11, 4294965248 }
  0x24   : > { %1189 = dma.done.wait (%p1279_p1), [#allocation7], 640  }
  0x25   : > { %1191 = vsyncadd (%p1279_p1), [#allocation7], 4294966656  ;;  %vm257_vm0 = vcmask 130048   ;;  %v372_v0 = vld [vmem:[#allocation6 + $0x10] sm:$0xff]  ;;  %v373_v1 = vld [vmem:[#allocation6 + $0x18] sm:$0xff]  ;;  %vm390_vm1 = vcmask 1041409  }
  0x26   : > { %v370_v2 = vld [vmem:[#allocation6] sm:$0xff]  ;;  %897 = vmatpush.msra.mxu2 %v372_v0  ;;  %899 = vmatpush.msra.mxu3 %v373_v1  ;;  %v371_v3 = vld [vmem:[#allocation6 + $0x8] sm:$0xff]  ;;  %v251_v6 = vld [vmem:[%s1334_s12 + $0x50] sm:$0xff]  ;;  %vm392_vm2 = vcmask 1042434   ;;  %vm394_vm3 = vcmask 1043459   ;;  %vm396_vm4 = vcmask 1044484  }
  0x27   : > { %v249_v4 = vld [vmem:[%s1334_s12 + $0x40] sm:$0xff]  ;;  %v250_v5 = vld [vmem:[%s1334_s12 + $0x48] sm:$0xff]  ;;  %v252_v7 = vld [vmem:[%s1334_s12 + $0x58] sm:$0xff]  ;;  %429 = vmatpush.msra.mxu0 %v372_v0  ;;  %452 = vmatpush.msra.mxu1 %v373_v1  ;;  %v328_v16 = vsel %vm257_vm0, %v251_v6, 0.0  ;;  %vm398_vm5 = vcmask 1045509   ;;  %vm400_vm6 = vcmask 1046534  }
  0x28   : > { %v253_v8 = vld [vmem:[%s1334_s12 + $0x60] sm:$0xff]  ;;  %v314_v9 = vsel %vm257_vm0, %v249_v4, 0.0  ;;  %v321_v10 = vsel %vm257_vm0, %v250_v5, 0.0  ;;  %898 = vmatpush.msra.mxu2 %v370_v2  ;;  %900 = vmatpush.msra.mxu3 %v371_v3  ;;  %v254_v11 = vld [vmem:[%s1334_s12 + $0x68] sm:$0xff]  ;;  %v255_v12 = vld [vmem:[%s1334_s12 + $0x70] sm:$0xff]  ;;  %v329_v17 = vrot.slane %v328_v16, 4 }
  0x29   : > { %v256_v13 = vld [vmem:[%s1334_s12 + $0x78] sm:$0xff]  ;;  %v315_v14 = vrot.slane %v314_v9, 4  ;;  %v322_v15 = vrot.slane %v321_v10, 4  ;;  %v335_v18 = vsel %vm257_vm0, %v252_v7, 0.0  ;;  %v342_v19 = vsel %vm257_vm0, %v253_v8, 0.0  ;;  %430 = vmatpush.msra.mxu0 %v370_v2  ;;  %453 = vmatpush.msra.mxu1 %v371_v3  ;;  %v241_v53 = vld [vmem:[%s1334_s12] sm:$0xff] }
  0x2a   : > { %v349_v20 = vsel %vm257_vm0, %v254_v11, 0.0  ;;  %v336_v23 = vrot.slane %v335_v18, 4  ;;  %v343_v24 = vrot.slane %v342_v19, 4  ;;  %v330_v25 = vadd.f32 %v329_v17, %v328_v16  ;;  %v242_v62 = vld [vmem:[%s1334_s12 + $0x8] sm:$0xff]  ;;  %v243_v63 = vld [vmem:[%s1334_s12 + $0x10] sm:$0xff]  ;;  %v244_v8 = vld [vmem:[%s1334_s12 + $0x18] sm:$0xff] }
  0x2b   : > { %v316_v21 = vadd.f32 %v315_v14, %v314_v9  ;;  %v323_v22 = vadd.f32 %v322_v15, %v321_v10  ;;  %v350_v26 = vrot.slane %v349_v20, 4  ;;  %v356_v27 = vsel %vm257_vm0, %v255_v12, 0.0  ;;  %v245_v10 = vld [vmem:[%s1334_s12 + $0x20] sm:$0xff]  ;;  %s896_s19 = sshll.u32 %s1210_s15, 5  ;;  %p888_p1 = scmp.ne.s32.totalorder %s1210_s15, 3 }
  0x2c   : > { %v363_v28 = vsel %vm257_vm0, %v256_v13, 0.0  ;;  %v337_v31 = vadd.f32 %v336_v23, %v335_v18  ;;  %v344_v32 = vadd.f32 %v343_v24, %v342_v19  ;;  %v331_v33 = vrot.slane %v330_v25, 2  ;;  %v246_v19 = vld [vmem:[%s1334_s12 + $0x28] sm:$0xff]  ;;  %s464_s20 = scalar_lea.vmem [#allocation2], %s896_s19 }
  0x2d   : > { %v317_v29 = vrot.slane %v316_v21, 2  ;;  %v324_v30 = vrot.slane %v323_v22, 2  ;;  %v351_v34 = vadd.f32 %v350_v26, %v349_v20  ;;  %v357_v35 = vrot.slane %v356_v27, 4  ;;  %v247_v20 = vld [vmem:[%s1334_s12 + $0x30] sm:$0xff] }
  0x2e   : > { %v364_v36 = vrot.slane %v363_v28, 4  ;;  %v338_v39 = vrot.slane %v337_v31, 2  ;;  %v345_v40 = vrot.slane %v344_v32, 2  ;;  %v332_v41 = vadd.f32 %v331_v33, %v330_v25 }
  0x2f   : > { %v318_v37 = vadd.f32 %v317_v29, %v316_v21  ;;  %v325_v38 = vadd.f32 %v324_v30, %v323_v22  ;;  %v352_v42 = vrot.slane %v351_v34, 2  ;;  %v358_v43 = vadd.f32 %v357_v35, %v356_v27  ;;  %v248_v29 = vld [vmem:[%s1334_s12 + $0x38] sm:$0xff] }
  0x30   : > { %v365_v44 = vadd.f32 %v364_v36, %v363_v28  ;;  %vm402_vm7 = vcmask 1047559   ;;  %v339_v47 = vadd.f32 %v338_v39, %v337_v31  ;;  %v346_v48 = vadd.f32 %v345_v40, %v344_v32 }
  0x31   : > { %v319_v45 = vrot.slane %v318_v37, 1  ;;  %v326_v46 = vrot.slane %v325_v38, 1  ;;  %v333_v49 = vrot.slane %v332_v41, 1  ;;  %v353_v50 = vadd.f32 %v352_v42, %v351_v34 }
  0x32   : > { %v359_v51 = vrot.slane %v358_v43, 2  ;;  %v366_v52 = vrot.slane %v365_v44, 2  ;;  %v340_v56 = vrot.slane %v339_v47, 1  ;;  %v347_v57 = vrot.slane %v346_v48, 1 }
  0x33   : > { %v320_v54 = vadd.f32 %v319_v45, %v318_v37  ;;  %v327_v55 = vadd.f32 %v326_v46, %v325_v38  ;;  %v334_v58 = vadd.f32 %v333_v49, %v332_v41  ;;  %v354_v59 = vrot.slane %v353_v50, 1 }
  0x34   : > { %v360_v60 = vadd.f32 %v359_v51, %v358_v43  ;;  %v367_v61 = vadd.f32 %v366_v52, %v365_v44  ;;  %v341_v0 = vadd.f32 %v340_v56, %v339_v47  ;;  %v348_v1 = vadd.f32 %v347_v57, %v346_v48 }
  0x35   : > { %v404_v2 = vsel %vm390_vm1, %v327_v55, %v320_v54  ;;  %v258_v3 = vsel %vm257_vm0, %v241_v53, 0.0  ;;  %v355_v4 = vadd.f32 %v354_v59, %v353_v50  ;;  %v265_v12 = vsel %vm257_vm0, %v242_v62, 0.0 }
  0x36   : > { %v361_v5 = vrot.slane %v360_v60, 1  ;;  %v368_v6 = vrot.slane %v367_v61, 1  ;;  %v405_v7 = vsel %vm392_vm2, %v334_v58, %v404_v2  ;;  %v259_v11 = vrot.slane %v258_v3, 4 }
  0x37   : > { %v406_v9 = vsel %vm394_vm3, %v341_v0, %v405_v7  ;;  %v272_v13 = vsel %vm257_vm0, %v243_v63, 0.0  ;;  %v266_v17 = vrot.slane %v265_v12, 4  ;;  %v279_v23 = vsel %vm257_vm0, %v244_v8, 0.0 }
  0x38   : > { %v362_v14 = vadd.f32 %v361_v5, %v360_v60  ;;  %v369_v15 = vadd.f32 %v368_v6, %v367_v61  ;;  %v407_v16 = vsel %vm396_vm4, %v348_v1, %v406_v9  ;;  %v260_v21 = vadd.f32 %v259_v11, %v258_v3 }
  0x39   : > { %v408_v18 = vsel %vm398_vm5, %v355_v4, %v407_v16  ;;  %v273_v22 = vrot.slane %v272_v13, 4  ;;  %v267_v25 = vadd.f32 %v266_v17, %v265_v12  ;;  %v280_v26 = vrot.slane %v279_v23, 4 }
  0x3a   : > { %v409_v24 = vsel %vm400_vm6, %v362_v14, %v408_v18  ;;  %v286_v27 = vsel %vm257_vm0, %v245_v10, 0.0  ;;  %v261_v30 = vrot.slane %v260_v21, 2  ;;  %v293_v35 = vsel %vm257_vm0, %v246_v19, 0.0 }
  0x3b   : > { %v410_v28 = vsel %vm402_vm7, %v369_v15, %v409_v24  ;;  %v274_v31 = vadd.f32 %v273_v22, %v272_v13  ;;  %v287_v32 = vrot.slane %v286_v27, 4  ;;  %v268_v33 = vrot.slane %v267_v25, 2 }
  0x3c   : > { %882 = vmatmul.msk.f32.vlgmr.msra.gmra.mxu2 %vm257_vm0, %v410_v28  ;;  %884 = vmatmul.msk.f32.vlgmr.msra.gmra.mxu3 %vm257_vm0, %v410_v28  ;;  %v281_v34 = vadd.f32 %v280_v26, %v279_v23  ;;  %v300_v36 = vsel %vm257_vm0, %v247_v20, 0.0  ;;  %v262_v37 = vadd.f32 %v261_v30, %v260_v21  ;;  %v294_v40 = vrot.slane %v293_v35, 4 }
  0x3d   : > { %v275_v38 = vrot.slane %v274_v31, 2  ;;  %v288_v39 = vadd.f32 %v287_v32, %v286_v27  ;;  %v269_v41 = vadd.f32 %v268_v33, %v267_v25  ;;  %v301_v43 = vrot.slane %v300_v36, 4 }
  0x3e   : > { %v282_v42 = vrot.slane %v281_v34, 2  ;;  %v307_v44 = vsel %vm257_vm0, %v248_v29, 0.0  ;;  %v263_v45 = vrot.slane %v262_v37, 1  ;;  %v295_v48 = vadd.f32 %v294_v40, %v293_v35 }
  0x3f   : > { %v276_v46 = vadd.f32 %v275_v38, %v274_v31  ;;  %v289_v47 = vrot.slane %v288_v39, 2  ;;  %v270_v49 = vrot.slane %v269_v41, 1  ;;  %v302_v51 = vadd.f32 %v301_v43, %v300_v36 }
  0x40   : > { %v283_v50 = vadd.f32 %v282_v42, %v281_v34  ;;  %v308_v52 = vrot.slane %v307_v44, 4  ;;  %v264_v53 = vadd.f32 %v263_v45, %v262_v37  ;;  %v296_v56 = vrot.slane %v295_v48, 2 }
  0x41   : > { %v277_v54 = vrot.slane %v276_v46, 1  ;;  %v290_v55 = vadd.f32 %v289_v47, %v288_v39  ;;  %v271_v57 = vadd.f32 %v270_v49, %v269_v41  ;;  %v303_v59 = vrot.slane %v302_v51, 2 }
  0x42   : > { %v284_v58 = vrot.slane %v283_v50, 1  ;;  %v309_v60 = vadd.f32 %v308_v52, %v307_v44  ;;  %v297_v63 = vadd.f32 %v296_v56, %v295_v48 }
  0x43   : > { %v278_v61 = vadd.f32 %v277_v54, %v276_v46  ;;  %v291_v62 = vrot.slane %v290_v55, 1  ;;  %v304_v1 = vadd.f32 %v303_v59, %v302_v51  ;;  %v391_v3 = vsel %vm390_vm1, %v271_v57, %v264_v53 }
  0x44   : > { %v285_v0 = vadd.f32 %v284_v58, %v283_v50  ;;  %v310_v2 = vrot.slane %v309_v60, 2  ;;  %v298_v5 = vrot.slane %v297_v63, 1 }
  0x45   : > { %v292_v4 = vadd.f32 %v291_v62, %v290_v55  ;;  %v393_v6 = vsel %vm392_vm2, %v278_v61, %v391_v3  ;;  %v305_v7 = vrot.slane %v304_v1, 1 }
  0x46   : > { %v311_v8 = vadd.f32 %v310_v2, %v309_v60  ;;  %v395_v9 = vsel %vm394_vm3, %v285_v0, %v393_v6  ;;  %v299_v10 = vadd.f32 %v298_v5, %v297_v63 }
  0x47   : > { %v397_v11 = vsel %vm396_vm4, %v292_v4, %v395_v9  ;;  %v306_v12 = vadd.f32 %v305_v7, %v304_v1 }
  0x48   : > { %v312_v13 = vrot.slane %v311_v8, 1  ;;  %v399_v14 = vsel %vm398_vm5, %v299_v10, %v397_v11 }
  0x49   : > { %v401_v16 = vsel %vm400_vm6, %v306_v12, %v399_v14 }
  0x4a   : > { %v313_v15 = vadd.f32 %v312_v13, %v311_v8 }
  0x4c   : > { %v403_v17 = vsel %vm402_vm7, %v313_v15, %v401_v16 }
  0x4d   : > { %881 = vmatmul.msk.f32.vlgmr.msra.gmra.mxu0 %vm257_vm0, %v403_v17  ;;  %883 = vmatmul.msk.f32.vlgmr.msra.gmra.mxu1 %vm257_vm0, %v403_v17 }
  0xbf   : > { %v435_v18 = vpop.f32.mrf.mxu2  ;;  %v458_v19 = vpop.f32.mrf.mxu3 }
  0xc0   : > { %467 = vst [vmem:[%s464_s20 + $0x10] sm:$0xff] %v435_v18 }
  0xc1   : > { %468 = vst [vmem:[%s464_s20 + $0x18] sm:$0xff] %v458_v19 }
  0xc8   : > { %472 = sbr.rel (%p888_p1) target bundleno = 832 (0x340), region = 48 }
  0xca   : > { %v432_v20 = vpop.f32.mrf.mxu0  ;;  %v455_v21 = vpop.f32.mrf.mxu1 }
  0xcb   : > { %465 = vst [vmem:[%s464_s20] sm:$0xff] %v432_v20 }
  0xcc   : > { %466 = vst [vmem:[%s464_s20 + $0x8] sm:$0xff] %v455_v21 }
  0xcd   : > { %v1396_v22 = vld [vmem:[#allocation8] sm:$0xff] }
  0xd3   : > { %v1398_v23 = vld [vmem:[#allocation2 + $0x40] sm:$0xff]  ;;  %v1410_v29 = vld [vmem:[#allocation2 + $0x50] sm:$0xff] }
  0xd4   : > { %v1400_v24 = vld [vmem:[#allocation2 + $0x20] sm:$0xff]  ;;  %v494_v25 = vmul.f32 %v1398_v23, %v1396_v22  ;;  %v1412_v30 = vld [vmem:[#allocation2 + $0x30] sm:$0xff]  ;;  %v495_v32 = vmul.f32 %v1410_v29, %v1396_v22 }
  0xd5   : > { %v492_v26 = vmul.f32 %v1400_v24, %v1396_v22  ;;  %v1406_v27 = vld [vmem:[#allocation2] sm:$0xff]  ;;  %v1414_v31 = vld [vmem:[#allocation2 + $0x10] sm:$0xff]  ;;  %v493_v33 = vmul.f32 %v1412_v30, %v1396_v22 }
  0xd6   : > { %v490_v28 = vmul.f32 %v1406_v27, %v1396_v22  ;;  %506 = vadd.xlane.f32.xlu2 %v494_v25  ;;  %v491_v34 = vmul.f32 %v1414_v31, %v1396_v22  ;;  %v1422_v35 = vld [vmem:[#allocation2 + $0x70] sm:$0xff]  ;;  %v1424_v36 = vld [vmem:[#allocation2 + $0x60] sm:$0xff] }
  0xd7   : > { %502 = vadd.xlane.f32.xlu1 %v492_v26  ;;  %v497_v37 = vmul.f32 %v1422_v35, %v1396_v22  ;;  %v496_v38 = vmul.f32 %v1424_v36, %v1396_v22 }
  0xd8   : > { %498 = vadd.xlane.f32.xlu0 %v490_v28 }
  0xde   : > { %508 = vadd.xlane.f32.xlu2 %v495_v32 }
  0xdf   : > { %504 = vadd.xlane.f32.xlu1 %v493_v33 }
  0xe0   : > { %500 = vadd.xlane.f32.xlu0 %v491_v34 }
  0xe7   : > { %512 = vadd.xlane.f32.xlu1 %v497_v37  ;;  %v1430_v37 = vld [vmem:[#allocation2 + $0x8] sm:$0xff] }
  0xe8   : > { %510 = vadd.xlane.f32.xlu0 %v496_v38  ;;  %v1432_v38 = vld [vmem:[#allocation2 + $0x18] sm:$0xff] }
 0x149   : > { %v507_v41 = vpop.xlane.xlu2 %506 }
 0x14a   : > { %v503_v39 = vpop.xlane.xlu1 %502 }
 0x14b   : > { %v499_v40 = vpop.xlane.xlu0 %498 }
 0x14c   : > { %v514_v49 = vmax.f32 %v499_v40, %v507_v41 }
 0x151   : > { %v509_v44 = vpop.xlane.xlu2 %508 }
 0x152   : > { %v505_v42 = vpop.xlane.xlu1 %504 }
 0x153   : > { %v501_v43 = vpop.xlane.xlu0 %500 }
 0x154   : > { %v515_v45 = vmax.f32 %v501_v43, %v509_v44 }
 0x156   : > { %v518_v51 = vmax.f32 %v514_v49, %v515_v45 }
 0x15a   : > { %v513_v46 = vpop.xlane.xlu1 %512 }
 0x15b   : > { %v517_v47 = vmax.f32 %v505_v42, %v513_v46  ;;  %v511_v48 = vpop.xlane.xlu0 %510 }
 0x15c   : > { %v516_v50 = vmax.f32 %v503_v39, %v511_v48 }
 0x15e   : > { %v519_v52 = vmax.f32 %v516_v50, %v517_v47  ;;  %v1441_v50 = vld [vmem:[#allocation2 + $0x48] sm:$0xff] }
 0x160   : > { %v520_v53 = vmax.f32 %v518_v51, %v519_v52 }
 0x162   : > { %v521_v54 = vsub.f32 %v499_v40, %v520_v53  ;;  %v522_v55 = vsub.f32 %v501_v43, %v520_v53  ;;  %v523_v56 = vsub.f32 %v503_v39, %v520_v53  ;;  %v524_v57 = vsub.f32 %v505_v42, %v520_v53  ;;  %v1434_v42 = vld [vmem:[#allocation2 + $0x28] sm:$0xff] }
 0x163   : > { %v525_v60 = vsub.f32 %v507_v41, %v520_v53  ;;  %v526_v62 = vsub.f32 %v509_v44, %v520_v53  ;;  %v527_v0 = vsub.f32 %v511_v48, %v520_v53  ;;  %v528_v2 = vsub.f32 %v513_v46, %v520_v53  ;;  %v1438_v46 = vld [vmem:[#allocation2 + $0x38] sm:$0xff] }
 0x164   : > { %v529_v58 = vmul.f32 1.442695, %v521_v54  ;;  %v531_v59 = vmul.f32 1.442695, %v522_v55  ;;  %v533_v61 = vmul.f32 1.442695, %v523_v56 }
 0x165   : > { %v535_v63 = vmul.f32 1.442695, %v524_v57  ;;  %v537_v1 = vmul.f32 1.442695, %v525_v60  ;;  %v539_v3 = vmul.f32 1.442695, %v526_v62 }
 0x166   : > { %988 = vpow2.f32 %v529_v58  ;;  %v541_v6 = vmul.f32 1.442695, %v527_v0  ;;  %v543_v9 = vmul.f32 1.442695, %v528_v2  ;;  %v1444_v54 = vld [vmem:[#allocation2 + $0x58] sm:$0xff]  ;;  %v1447_v58 = vld [vmem:[#allocation2 + $0x68] sm:$0xff] }
 0x167   : > { %990 = vpow2.f32 %v531_v59  ;;  %v1450_v62 = vld [vmem:[#allocation2 + $0x78] sm:$0xff] }
 0x168   : > { %992 = vpow2.f32 %v533_v61 }
 0x169   : > { %994 = vpow2.f32 %v535_v63 }
 0x16a   : > { %996 = vpow2.f32 %v537_v1 }
 0x16b   : > { %998 = vpow2.f32 %v539_v3 }
 0x16c   : > { %v989_v4 = vpop.eup %988  ;;  %1000 = vpow2.f32 %v541_v6 }
 0x16d   : > { %v991_v5 = vpop.eup %990  ;;  %1002 = vpow2.f32 %v543_v9 }
 0x16e   : > { %v545_v7 = vadd.f32 %v991_v5, %v989_v4  ;;  %v993_v8 = vpop.eup %992 }
 0x16f   : > { %v995_v11 = vpop.eup %994 }
 0x170   : > { %v546_v10 = vadd.f32 %v993_v8, %v545_v7  ;;  %v997_v13 = vpop.eup %996 }
 0x171   : > { %v999_v15 = vpop.eup %998 }
 0x172   : > { %v547_v12 = vadd.f32 %v995_v11, %v546_v10  ;;  %v1001_v17 = vpop.eup %1000 }
 0x173   : > { %v1003_v19 = vpop.eup %1002 }
 0x174   : > { %v548_v14 = vadd.f32 %v997_v13, %v547_v12 }
 0x176   : > { %v549_v16 = vadd.f32 %v999_v15, %v548_v14 }
 0x178   : > { %v550_v18 = vadd.f32 %v1001_v17, %v549_v16 }
 0x17a   : > { %v551_v20 = vadd.f32 %v1003_v19, %v550_v18 }
 0x17c   : > { %1004 = vrcp.f32 %v551_v20 }
 0x182   : > { %v1005_v21 = vpop.eup %1004 }
 0x183   : > { %v553_v25 = vmul.f32 %v1005_v21, %v551_v20 }
 0x185   : > { %v554_v26 = vsub.f32 2.0, %v553_v25 }
 0x187   : > { %v555_v28 = vmul.f32 %v1005_v21, %v554_v26 }
 0x189   : > { %v556_v32 = vmul.f32 %v555_v28, %v551_v20 }
 0x18b   : > { %v557_v33 = vsub.f32 2.0, %v556_v32 }
 0x18d   : > { %v558_v34 = vmul.f32 %v557_v33, %v555_v28 }
 0x18f   : > { %v559_v39 = vmul.f32 %v989_v4, %v558_v34  ;;  %v560_v40 = vmul.f32 %v991_v5, %v558_v34  ;;  %v561_v41 = vmul.f32 %v993_v8, %v558_v34  ;;  %v562_v43 = vmul.f32 %v995_v11, %v558_v34 }
 0x190   : > { %v563_v47 = vmul.f32 %v997_v13, %v558_v34  ;;  %v564_v51 = vmul.f32 %v999_v15, %v558_v34  ;;  %v565_v55 = vmul.f32 %v1001_v17, %v558_v34  ;;  %v566_v59 = vmul.f32 %v1003_v19, %v558_v34 }
 0x191   : > { %v567_v44 = vmul.f32 %v559_v39, %v1430_v37  ;;  %v568_v45 = vmul.f32 %v560_v40, %v1432_v38  ;;  %v569_v48 = vmul.f32 %v561_v41, %v1434_v42  ;;  %v570_v52 = vmul.f32 %v562_v43, %v1438_v46 }
 0x192   : > { %v571_v56 = vmul.f32 %v563_v47, %v1441_v50  ;;  %v572_v60 = vmul.f32 %v564_v51, %v1444_v54  ;;  %v573_v63 = vmul.f32 %v565_v55, %v1447_v58  ;;  %v574_v1 = vmul.f32 %v566_v59, %v1450_v62 }
 0x193   : > { %v575_v49 = vadd.f32 %v568_v45, %v567_v44 }
 0x195   : > { %v576_v53 = vadd.f32 %v575_v49, %v569_v48 }
 0x197   : > { %v577_v57 = vadd.f32 %v576_v53, %v570_v52 }
 0x199   : > { %v578_v61 = vadd.f32 %v577_v57, %v571_v56 }
 0x19b   : > { %v579_v0 = vadd.f32 %v578_v61, %v572_v60 }
 0x19d   : > { %v580_v2 = vadd.f32 %v579_v0, %v573_v63 }
 0x19f   : > { %v581_v3 = vadd.f32 %v580_v2, %v574_v1 }
 0x1a1   : > { %v1455_v4 = vadd.f32 %v581_v3, %v1396_v22 }
 0x1a3   : > { %v585_v5 = vmul.f32 %v1455_v4, %v1400_v24  ;;  %v584_v6 = vmul.f32 %v1455_v4, %v1414_v31  ;;  %v583_v7 = vmul.f32 %v1455_v4, %v1406_v27  ;;  %v588_v8 = vmul.f32 %v1455_v4, %v1410_v29 }
 0x1a4   : > { %v587_v9 = vmul.f32 %v1455_v4, %v1398_v23  ;;  %v586_v22 = vmul.f32 %v1455_v4, %v1412_v30  ;;  %v590_v10 = vmul.f32 %v1455_v4, %v1422_v35  ;;  %v589_v11 = vmul.f32 %v1455_v4, %v1424_v36 }
 0x1a5   : > { %595 = vadd.xlane.f32.xlu1 %v585_v5  ;;  %593 = vadd.xlane.f32.xlu0 %v584_v6 }
 0x1a6   : > { %591 = vadd.xlane.f32.xlu2 %v583_v7 }
 0x1ad   : > { %601 = vadd.xlane.f32.xlu1 %v588_v8  ;;  %599 = vadd.xlane.f32.xlu0 %v587_v9 }
 0x1ae   : > { %597 = vadd.xlane.f32.xlu2 %v586_v22 }
 0x1b5   : > { %605 = vadd.xlane.f32.xlu0 %v590_v10 }
 0x1b6   : > { %603 = vadd.xlane.f32.xlu2 %v589_v11 }
 0x218   : > { %v594_v12 = vpop.xlane.xlu0 %593  ;;  %v596_v14 = vpop.xlane.xlu1 %595 }
 0x219   : > { %v592_v13 = vpop.xlane.xlu2 %591 }
 0x220   : > { %v600_v15 = vpop.xlane.xlu0 %599  ;;  %v602_v17 = vpop.xlane.xlu1 %601 }
 0x221   : > { %v598_v16 = vpop.xlane.xlu2 %597  ;;  %v608_v18 = vmax.f32 %v594_v12, %v602_v17  ;;  %v607_v19 = vmax.f32 %v592_v13, %v600_v15 }
 0x223   : > { %v611_v28 = vmax.f32 %v607_v19, %v608_v18 }
 0x228   : > { %v606_v20 = vpop.xlane.xlu0 %605 }
 0x229   : > { %v610_v21 = vmax.f32 %v598_v16, %v606_v20  ;;  %v604_v25 = vpop.xlane.xlu2 %603 }
 0x22a   : > { %v609_v26 = vmax.f32 %v596_v14, %v604_v25 }
 0x22c   : > { %v612_v32 = vmax.f32 %v609_v26, %v610_v21 }
 0x22e   : > { %v613_v33 = vmax.f32 %v611_v28, %v612_v32 }
 0x230   : > { %v614_v34 = vsub.f32 %v592_v13, %v613_v33  ;;  %v615_v39 = vsub.f32 %v594_v12, %v613_v33  ;;  %v616_v40 = vsub.f32 %v596_v14, %v613_v33  ;;  %v617_v41 = vsub.f32 %v598_v16, %v613_v33 }
 0x231   : > { %v618_v45 = vsub.f32 %v600_v15, %v613_v33  ;;  %v619_v48 = vsub.f32 %v602_v17, %v613_v33  ;;  %v620_v51 = vsub.f32 %v604_v25, %v613_v33  ;;  %v621_v53 = vsub.f32 %v606_v20, %v613_v33 }
 0x232   : > { %v622_v43 = vmul.f32 1.442695, %v614_v34  ;;  %v624_v44 = vmul.f32 1.442695, %v615_v39  ;;  %v626_v47 = vmul.f32 1.442695, %v616_v40 }
 0x233   : > { %v628_v49 = vmul.f32 1.442695, %v617_v41  ;;  %v630_v52 = vmul.f32 1.442695, %v618_v45  ;;  %v632_v55 = vmul.f32 1.442695, %v619_v48 }
 0x234   : > { %1006 = vpow2.f32 %v622_v43  ;;  %v634_v59 = vmul.f32 1.442695, %v620_v51  ;;  %v636_v63 = vmul.f32 1.442695, %v621_v53 }
 0x235   : > { %1008 = vpow2.f32 %v624_v44 }
 0x236   : > { %1010 = vpow2.f32 %v626_v47 }
 0x237   : > { %1012 = vpow2.f32 %v628_v49 }
 0x238   : > { %1014 = vpow2.f32 %v630_v52 }
 0x239   : > { %1016 = vpow2.f32 %v632_v55 }
 0x23a   : > { %v1007_v56 = vpop.eup %1006  ;;  %1018 = vpow2.f32 %v634_v59 }
 0x23b   : > { %v1009_v57 = vpop.eup %1008  ;;  %1020 = vpow2.f32 %v636_v63 }
 0x23c   : > { %v638_v60 = vadd.f32 %v1009_v57, %v1007_v56  ;;  %v1011_v61 = vpop.eup %1010 }
 0x23d   : > { %v1013_v1 = vpop.eup %1012 }
 0x23e   : > { %v639_v0 = vadd.f32 %v1011_v61, %v638_v60  ;;  %v1015_v3 = vpop.eup %1014 }
 0x23f   : > { %v1017_v6 = vpop.eup %1016 }
 0x240   : > { %v640_v2 = vadd.f32 %v1013_v1, %v639_v0  ;;  %v1019_v8 = vpop.eup %1018 }
 0x241   : > { %v1021_v22 = vpop.eup %1020 }
 0x242   : > { %v641_v5 = vadd.f32 %v1015_v3, %v640_v2 }
 0x244   : > { %v642_v7 = vadd.f32 %v1017_v6, %v641_v5 }
 0x246   : > { %v643_v9 = vadd.f32 %v1019_v8, %v642_v7 }
 0x248   : > { %v644_v10 = vadd.f32 %v1021_v22, %v643_v9 }
 0x24a   : > { %1022 = vrcp.f32 %v644_v10 }
 0x250   : > { %v1023_v11 = vpop.eup %1022 }
 0x251   : > { %v646_v12 = vmul.f32 %v1023_v11, %v644_v10 }
 0x253   : > { %v647_v13 = vsub.f32 2.0, %v646_v12 }
 0x255   : > { %v648_v14 = vmul.f32 %v1023_v11, %v647_v13 }
 0x257   : > { %v649_v15 = vmul.f32 %v648_v14, %v644_v10 }
 0x259   : > { %v650_v16 = vsub.f32 2.0, %v649_v15 }
 0x25b   : > { %v651_v17 = vmul.f32 %v650_v16, %v648_v14 }
 0x25d   : > { %v652_v18 = vmul.f32 %v1007_v56, %v651_v17  ;;  %v653_v19 = vmul.f32 %v1009_v57, %v651_v17  ;;  %v654_v20 = vmul.f32 %v1011_v61, %v651_v17  ;;  %v655_v21 = vmul.f32 %v1013_v1, %v651_v17 }
 0x25e   : > { %v656_v28 = vmul.f32 %v1015_v3, %v651_v17  ;;  %v657_v34 = vmul.f32 %v1017_v6, %v651_v17  ;;  %v658_v41 = vmul.f32 %v1019_v8, %v651_v17  ;;  %v659_v45 = vmul.f32 %v1021_v22, %v651_v17 }
 0x25f   : > { %v660_v25 = vmul.f32 %v652_v18, %v1430_v37  ;;  %v661_v26 = vmul.f32 %v653_v19, %v1432_v38  ;;  %v662_v32 = vmul.f32 %v654_v20, %v1434_v42  ;;  %v663_v39 = vmul.f32 %v655_v21, %v1438_v46 }
 0x260   : > { %v664_v43 = vmul.f32 %v656_v28, %v1441_v50  ;;  %v665_v47 = vmul.f32 %v657_v34, %v1444_v54  ;;  %v666_v49 = vmul.f32 %v658_v41, %v1447_v58  ;;  %v667_v52 = vmul.f32 %v659_v45, %v1450_v62 }
 0x261   : > { %v668_v33 = vadd.f32 %v661_v26, %v660_v25 }
 0x263   : > { %v669_v40 = vadd.f32 %v668_v33, %v662_v32 }
 0x265   : > { %v670_v44 = vadd.f32 %v669_v40, %v663_v39 }
 0x267   : > { %v671_v48 = vadd.f32 %v670_v44, %v664_v43 }
 0x269   : > { %v672_v51 = vadd.f32 %v671_v48, %v665_v47 }
 0x26b   : > { %v673_v53 = vadd.f32 %v672_v51, %v666_v49 }
 0x26d   : > { %v674_v55 = vadd.f32 %v673_v53, %v667_v52 }
 0x26f   : > { %v1482_v56 = vadd.f32 %v674_v55, %v1455_v4 }
 0x271   : > { %v678_v57 = vmul.f32 %v1482_v56, %v1400_v24  ;;  %v677_v59 = vmul.f32 %v1482_v56, %v1414_v31  ;;  %v676_v60 = vmul.f32 %v1482_v56, %v1406_v27  ;;  %v681_v61 = vmul.f32 %v1482_v56, %v1410_v29 }
 0x272   : > { %v680_v63 = vmul.f32 %v1482_v56, %v1398_v23  ;;  %v679_v4 = vmul.f32 %v1482_v56, %v1412_v30  ;;  %v683_v24 = vmul.f32 %v1482_v56, %v1422_v35  ;;  %v682_v27 = vmul.f32 %v1482_v56, %v1424_v36 }
 0x273   : > { %688 = vadd.xlane.f32.xlu0 %v678_v57  ;;  %686 = vadd.xlane.f32.xlu2 %v677_v59 }
 0x274   : > { %684 = vadd.xlane.f32.xlu1 %v676_v60 }
 0x27b   : > { %694 = vadd.xlane.f32.xlu0 %v681_v61  ;;  %692 = vadd.xlane.f32.xlu2 %v680_v63 }
 0x27c   : > { %690 = vadd.xlane.f32.xlu1 %v679_v4 }
 0x283   : > { %698 = vadd.xlane.f32.xlu2 %v683_v24 }
 0x284   : > { %696 = vadd.xlane.f32.xlu1 %v682_v27 }
 0x2e6   : > { %v687_v31 = vpop.xlane.xlu2 %686  ;;  %v689_v29 = vpop.xlane.xlu0 %688 }
 0x2e7   : > { %v685_v0 = vpop.xlane.xlu1 %684 }
 0x2ee   : > { %v693_v1 = vpop.xlane.xlu2 %692  ;;  %v695_v23 = vpop.xlane.xlu0 %694 }
 0x2ef   : > { %v691_v2 = vpop.xlane.xlu1 %690  ;;  %v701_v3 = vmax.f32 %v687_v31, %v695_v23  ;;  %v700_v5 = vmax.f32 %v685_v0, %v693_v1 }
 0x2f1   : > { %v704_v9 = vmax.f32 %v700_v5, %v701_v3 }
 0x2f6   : > { %v699_v30 = vpop.xlane.xlu2 %698 }
 0x2f7   : > { %v703_v6 = vmax.f32 %v691_v2, %v699_v30  ;;  %v697_v7 = vpop.xlane.xlu1 %696 }
 0x2f8   : > { %v702_v8 = vmax.f32 %v689_v29, %v697_v7 }
 0x2fa   : > { %v705_v22 = vmax.f32 %v702_v8, %v703_v6 }
 0x2fc   : > { %v706_v35 = vmax.f32 %v704_v9, %v705_v22 }
 0x2fe   : > { %v707_v10 = vsub.f32 %v685_v0, %v706_v35  ;;  %v708_v11 = vsub.f32 %v687_v31, %v706_v35  ;;  %v709_v36 = vsub.f32 %v689_v29, %v706_v35  ;;  %v710_v12 = vsub.f32 %v691_v2, %v706_v35 }
 0x2ff   : > { %v711_v15 = vsub.f32 %v693_v1, %v706_v35  ;;  %v712_v17 = vsub.f32 %v695_v23, %v706_v35  ;;  %v713_v19 = vsub.f32 %v697_v7, %v706_v35  ;;  %v714_v21 = vsub.f32 %v699_v30, %v706_v35 }
 0x300   : > { %v715_v13 = vmul.f32 1.442695, %v707_v10  ;;  %v717_v14 = vmul.f32 1.442695, %v708_v11  ;;  %v719_v16 = vmul.f32 1.442695, %v709_v36 }
 0x301   : > { %v721_v18 = vmul.f32 1.442695, %v710_v12  ;;  %v723_v20 = vmul.f32 1.442695, %v711_v15  ;;  %v725_v25 = vmul.f32 1.442695, %v712_v17 }
 0x302   : > { %1024 = vpow2.f32 %v715_v13  ;;  %v727_v32 = vmul.f32 1.442695, %v713_v19  ;;  %v729_v39 = vmul.f32 1.442695, %v714_v21 }
 0x303   : > { %1026 = vpow2.f32 %v717_v14 }
 0x304   : > { %1028 = vpow2.f32 %v719_v16 }
 0x305   : > { %1030 = vpow2.f32 %v721_v18 }
 0x306   : > { %1032 = vpow2.f32 %v723_v20 }
 0x307   : > { %1034 = vpow2.f32 %v725_v25 }
 0x308   : > { %v1025_v26 = vpop.eup %1024  ;;  %1036 = vpow2.f32 %v727_v32 }
 0x309   : > { %v1027_v28 = vpop.eup %1026  ;;  %1038 = vpow2.f32 %v729_v39 }
 0x30a   : > { %v731_v33 = vadd.f32 %v1027_v28, %v1025_v26  ;;  %v1029_v34 = vpop.eup %1028 }
 0x30b   : > { %v1031_v41 = vpop.eup %1030 }
 0x30c   : > { %v732_v40 = vadd.f32 %v1029_v34, %v731_v33  ;;  %v1033_v44 = vpop.eup %1032 }
 0x30d   : > { %v1035_v47 = vpop.eup %1034 }
 0x30e   : > { %v733_v43 = vadd.f32 %v1031_v41, %v732_v40  ;;  %v1037_v49 = vpop.eup %1036 }
 0x30f   : > { %v1039_v52 = vpop.eup %1038 }
 0x310   : > { %v734_v45 = vadd.f32 %v1033_v44, %v733_v43 }
 0x312   : > { %v735_v48 = vadd.f32 %v1035_v47, %v734_v45 }
 0x314   : > { %v736_v51 = vadd.f32 %v1037_v49, %v735_v48 }
 0x316   : > { %v737_v53 = vadd.f32 %v1039_v52, %v736_v51 }
 0x318   : > { %1040 = vrcp.f32 %v737_v53 }
 0x31e   : > { %v1041_v55 = vpop.eup %1040 }
 0x31f   : > { %v739_v57 = vmul.f32 %v1041_v55, %v737_v53 }
 0x321   : > { %v740_v59 = vsub.f32 2.0, %v739_v57 }
 0x323   : > { %v741_v60 = vmul.f32 %v1041_v55, %v740_v59 }
 0x325   : > { %v742_v61 = vmul.f32 %v741_v60, %v737_v53 }
 0x327   : > { %v743_v63 = vsub.f32 2.0, %v742_v61 }
 0x329   : > { %v744_v4 = vmul.f32 %v743_v63, %v741_v60 }
 0x32b   : > { %v745_v24 = vmul.f32 %v1025_v26, %v744_v4  ;;  %v746_v27 = vmul.f32 %v1027_v28, %v744_v4  ;;  %v747_v31 = vmul.f32 %v1029_v34, %v744_v4  ;;  %v748_v0 = vmul.f32 %v1031_v41, %v744_v4 }
 0x32c   : > { %v749_v2 = vmul.f32 %v1033_v44, %v744_v4  ;;  %v750_v5 = vmul.f32 %v1035_v47, %v744_v4  ;;  %v751_v7 = vmul.f32 %v1037_v49, %v744_v4  ;;  %v752_v22 = vmul.f32 %v1039_v52, %v744_v4 }
 0x32d   : > { %v753_v29 = vmul.f32 %v745_v24, %v1430_v37  ;;  %v754_v1 = vmul.f32 %v746_v27, %v1432_v38  ;;  %v755_v23 = vmul.f32 %v747_v31, %v1434_v42  ;;  %v756_v30 = vmul.f32 %v748_v0, %v1438_v46 }
 0x32e   : > { %v757_v8 = vmul.f32 %v749_v2, %v1441_v50  ;;  %v758_v35 = vmul.f32 %v750_v5, %v1444_v54  ;;  %v759_v37 = vmul.f32 %v751_v7, %v1447_v58  ;;  %v760_v38 = vmul.f32 %v752_v22, %v1450_v62 }
 0x32f   : > { %v761_v3 = vadd.f32 %v754_v1, %v753_v29 }
 0x331   : > { %v762_v6 = vadd.f32 %v761_v3, %v755_v23 }
 0x333   : > { %v763_v9 = vadd.f32 %v762_v6, %v756_v30 }
 0x335   : > { %v764_v10 = vadd.f32 %v763_v9, %v757_v8 }
 0x337   : > { %v765_v11 = vadd.f32 %v764_v10, %v758_v35 }
 0x339   : > { %v766_v36 = vadd.f32 %v765_v11, %v759_v37 }
 0x33b   : > { %v767_v42 = vadd.f32 %v766_v36, %v760_v38 }
 0x33d   : > { %v768_v12 = vadd.f32 %v767_v42, %v1482_v56 }
 0x33f   : > { %769 = vst [vmem:[#allocation9] sm:$0xff] %v768_v12 }
 0x340 PF: > { %p931_p2 = scmp.eq.s32.totalorder %s868_s18, 3  ;;  %s780_s9 = sshll.u32 %s1535_s3, 4  ;;  %s781_s9 = int_to_ptr.hbm [resolvable:$true] %s780_s9 }
 0x341   : > { %s1226_s10 = smov [#allocation9]  }
 0x342   : > { %s778_s21 = sshll.u32 %s1226_s10, 4  ;;  %s779_s21 = int_to_ptr.vmem [resolvable:$true] %s778_s21 }
 0x343   : > { %912 = dma.vmem_to_hbm [thread:$0]  (%p931_p2), %s779_s21, 128, %s781_s9, [#allocation5]  }
 0x344   : > { %1193 = dma.done.wait (%p931_p2), [#allocation5], 128  }
 0x345   : > { %1195 = vsyncadd (%p931_p2), [#allocation5], 4294967168 }
 0x346 PF: > { %s18_s17 = sadd.s32 1, %s1218_s17   ;;  %s1540_s12 = smov %s1202_s13 }
 0x347   : > { %p15_p3 = scmp.ge.s32.totalorder %s18_s17, 6   ;;  %s1541_s13 = smov %s1206_s14 }
 0x348   : > { %s1542_s14 = smov %s1322_s22  ;;  %s1543_s15 = smov %s1214_s16 }
 0x349   : > { %s1544_s16 = smov %s1546_s7  ;;  %17 = sbr.rel (!%p15_p3) target bundleno = 6 (0x6), region = 84 }
 0x34e   :  { %794 = vsyncpa [#allocation4], 1 }
 0x34f   :  { %796 = vsyncpa [#allocation4 + $0x1], 1 }
 0x350   :  { %797 = vsyncpa [#allocation7], 1 }
 0x351   :  { %798 = vsyncpa [#allocation5], 1 }
 0x352   :  { %800 = vsyncpa [#allocation5 + $0x1], 1 }

</bundles_post_ra>
